<compile_context>
chip_gen: v7x
topology: tpu7x:2x2x1
jax: 0.10.0
libtpu: 0.0.40
codegen_flags: <defaults>
</compile_context>

<pallas_src>
import functools

import jax
import jax.numpy as jnp
from jax.experimental import pallas as pl
from jax.experimental.pallas import tpu as pltpu


def _round_up(x, m):
    return ((x + m - 1) // m) * m


def _select_tiles(n_pad):
    """Generation-aware MXU tile shapes (row tile TM, reduction tile TK)."""
    try:
        kind = jax.devices()[0].device_kind.lower()
    except Exception:  # pragma: no cover - defensive
        kind = ""
    if "v5" in kind:
        tm_target, tk_target = 128, 512   # v5e MXU is 4x128^2
    else:
        tm_target, tk_target = 256, 512   # v6e / v7x MXU is 2x256^2
    tm = min(tm_target, n_pad)
    tk = min(tk_target, n_pad)
    while n_pad % tm:
        tm //= 2
    while n_pad % tk:
        tk //= 2
    return tm, tk


# ----------------------------------------------------------------------------
# Tiled single-layer propagation:  out = G @ E
#   grid = (N/TM, N/TK); G tile (TM, TK) bf16, E tile (TK, D) bf16,
#   f32 VMEM accumulator, init at k==0, store at k==last (P1 + P3).
# ----------------------------------------------------------------------------
def _layer_matmul_kernel(g_ref, e_ref, out_ref, acc_ref):
    k = pl.program_id(1)

    @pl.when(k == 0)
    def _():
        acc_ref[...] = jnp.zeros_like(acc_ref)

    acc_ref[...] += jnp.dot(
        g_ref[...], e_ref[...], preferred_element_type=jnp.float32
    )

    @pl.when(k == pl.num_programs(1) - 1)
    def _():
        out_ref[...] = acc_ref[...].astype(out_ref.dtype)


def _propagate_layer(g_bf16, emb_bf16, tm, tk):
    n_pad = g_bf16.shape[0]
    d_pad = emb_bf16.shape[1]
    grid = (n_pad // tm, n_pad // tk)

    flops = 2 * n_pad * n_pad * d_pad
    bytes_accessed = (
        g_bf16.size * g_bf16.dtype.itemsize
        + emb_bf16.size * emb_bf16.dtype.itemsize
        + n_pad * d_pad * 4
    )

    return pl.pallas_call(
        _layer_matmul_kernel,
        out_shape=jax.ShapeDtypeStruct((n_pad, d_pad), jnp.float32),
        grid_spec=pltpu.PrefetchScalarGridSpec(
            num_scalar_prefetch=0,
            grid=grid,
            in_specs=[
                pl.BlockSpec((tm, tk), lambda i, k: (i, k)),
                pl.BlockSpec((tk, d_pad), lambda i, k: (k, 0)),
            ],
            out_specs=pl.BlockSpec((tm, d_pad), lambda i, k: (i, 0)),
            scratch_shapes=[pltpu.VMEM((tm, d_pad), jnp.float32)],
        ),
        compiler_params=pltpu.CompilerParams(
            dimension_semantics=("parallel", "arbitrary"),
            vmem_limit_bytes=32 * 1024 * 1024,  # safe on v5e/v6e/v7x; usage is ~1-2 MiB
        ),
        cost_estimate=pl.CostEstimate(
            flops=flops, transcendentals=0, bytes_accessed=bytes_accessed
        ),
    )(g_bf16, emb_bf16)


# ----------------------------------------------------------------------------
# LightGCN.computer():
#   all_emb = concat(user_emb, item_emb)
#   embs    = [all_emb, G@all_emb, G@(G@all_emb), ...]
#   light_out = mean(embs)
# Layer loop + accumulation live in the wrapper; each G@E is a tiled Pallas kernel.
# ----------------------------------------------------------------------------
def lightgcn_computer(graph, all_emb, n_layers):
    N, D = all_emb.shape
    n_pad = _round_up(N, 256)   # lane-dense last dims for every tile
    d_pad = _round_up(D, 128)
    tm, tk = _select_tiles(n_pad)

    g_pad = jnp.zeros((n_pad, n_pad), jnp.bfloat16)
    g_pad = g_pad.at[:N, :N].set(graph.astype(jnp.bfloat16))

    cur = jnp.zeros((n_pad, d_pad), jnp.float32)
    cur = cur.at[:N, :D].set(all_emb.astype(jnp.float32))

    acc = cur
    for _ in range(n_layers):
        cur = _propagate_layer(g_pad, cur.astype(jnp.bfloat16), tm, tk)
        acc = acc + cur

    light_out = acc / jnp.float32(n_layers + 1)
    return light_out[:N, :D].astype(all_emb.dtype)


# ----------------------------------------------------------------------------
# LightGCN.forward():
#   gamma = sum(light_out_users[users] * light_out_items[items], axis=1)
# The gather + per-row dot product is tiny (B x D) and left to XLA; a Pallas score
# kernel at this size is pure launch overhead with a lane-width-1 output.
# ----------------------------------------------------------------------------
def lightgcn_forward(user_weight, item_weight, graph, users, items, n_layers):
    num_users = user_weight.shape[0]
    all_emb = jnp.concatenate([user_weight, item_weight], axis=0)
    light_out = lightgcn_computer(graph, all_emb, n_layers)
    users_emb = light_out[:num_users][users]
    items_emb = light_out[num_users:][items]
    gamma = jnp.sum(users_emb * items_emb, axis=1)
    return gamma


# Pure-JAX f32 reference for a correctness check.
def _reference_forward(user_weight, item_weight, graph, users, items, n_layers):
    all_emb = jnp.concatenate([user_weight, item_weight], axis=0)
    embs = [all_emb]
    cur = all_emb
    for _ in range(n_layers):
        cur = graph @ cur
        embs.append(cur)
    light_out = jnp.mean(jnp.stack(embs, axis=1), axis=1)
    nu = user_weight.shape[0]
    return jnp.sum(light_out[:nu][users] * light_out[nu:][items], axis=1)


def _build_normalized_graph(key, num_users, num_items):
    # Synthetic bipartite interaction matrix R, then D^{-1/2} A D^{-1/2} as LightGCN uses.
    R = (jax.random.uniform(key, (num_users, num_items)) < 0.2).astype(jnp.float32)
    N = num_users + num_items
    A = jnp.zeros((N, N), jnp.float32)
    A = A.at[:num_users, num_users:].set(R)
    A = A.at[num_users:, :num_users].set(R.T)
    deg = jnp.sum(A, axis=1)
    d_inv_sqrt = jnp.where(deg > 0, 1.0 / jnp.sqrt(jnp.maximum(deg, 1e-12)), 0.0)
    return A * d_inv_sqrt[:, None] * d_inv_sqrt[None, :]


if __name__ == "__main__":
    # Small but non-trivial shapes: N = 192 + 448 = 640 -> padded to 768 so the
    # propagation kernel actually runs a multi-tile (row, K) grid.
    num_users, num_items, latent_dim, n_layers = 192, 448, 128, 3
    batch = 16

    key = jax.random.PRNGKey(0)
    k_u, k_i, k_g, k_bu, k_bi = jax.random.split(key, 5)

    # nn.init.normal_(std=0.1) equivalents
    user_weight = 0.1 * jax.random.normal(k_u, (num_users, latent_dim), jnp.float32)
    item_weight = 0.1 * jax.random.normal(k_i, (num_items, latent_dim), jnp.float32)

    graph = _build_normalized_graph(k_g, num_users, num_items)

    users = jax.random.randint(k_bu, (batch,), 0, num_users)
    items = jax.random.randint(k_bi, (batch,), 0, num_items)

    gamma = lightgcn_forward(user_weight, item_weight, graph, users, items, n_layers)
    gamma = jax.block_until_ready(gamma)

    ref = _reference_forward(user_weight, item_weight, graph, users, items, n_layers)
    assert gamma.shape == (batch,)
    # bf16 graph / bf16 matmul inputs with f32 accumulation: compare at ~1e-2 tolerance.
    assert jnp.allclose(gamma, ref, atol=2e-2, rtol=2e-2), (gamma, ref)

    print("KERNEL_OK")
</pallas_src>

<mosaic_0001>
module attributes {stable_mosaic.version = 11 : i64} {
  func.func @_layer_matmul_kernel(%arg0: i32, %arg1: i32, %arg2: memref<256x256xbf16, #tpu.memory_space<vmem>>, %arg3: memref<256x128xbf16, #tpu.memory_space<vmem>>, %arg4: memref<256x128xf32, #tpu.memory_space<vmem>>, %arg5: memref<256x128xf32, #tpu.memory_space<vmem>>) attributes {dimension_semantics = [#tpu.dimension_semantics<parallel>, #tpu.dimension_semantics<arbitrary>], iteration_bounds = array<i64: 3, 3>, scalar_prefetch = 0 : i64, scratch_operands = 1 : i64, tpu.core_type = #tpu.core_type<tc>, window_params = [{transform_indices = @transform_0, window_bounds = array<i64: 256, 256>}, {transform_indices = @transform_1, window_bounds = array<i64: 256, 128>}, {transform_indices = @transform_2, window_bounds = array<i64: 256, 128>}]} {
    %c0_i32 = arith.constant 0 : i32
    %0 = arith.cmpi eq, %arg1, %c0_i32 : i32
    %1 = arith.extui %0 : i1 to i32
    %c0_i32_0 = arith.constant 0 : i32
    %2 = arith.cmpi ne, %1, %c0_i32_0 : i32
    scf.if %2 {
      %cst_9 = arith.constant 0.000000e+00 : f32
      %12 = vector.broadcast %cst_9 : f32 to vector<256x128xf32>
      %c0_10 = arith.constant 0 : index
      %c0_11 = arith.constant 0 : index
      %13 = vector.load %arg5[%c0_10, %c0_11] : memref<256x128xf32, #tpu.memory_space<vmem>>, vector<256x128xf32>
      tpu.vector_store %arg5[%c0_10, %c0_11], %12 {strides = array<i32>} : memref<256x128xf32, #tpu.memory_space<vmem>>, vector<256x128xf32>,
    } else {
    }
    %c0 = arith.constant 0 : index
    %c0_1 = arith.constant 0 : index
    %3 = vector.load %arg5[%c0, %c0_1] : memref<256x128xf32, #tpu.memory_space<vmem>>, vector<256x128xf32>
    %c0_2 = arith.constant 0 : index
    %c0_3 = arith.constant 0 : index
    %4 = vector.load %arg2[%c0_2, %c0_3] : memref<256x256xbf16, #tpu.memory_space<vmem>>, vector<256x256xbf16>
    %c0_4 = arith.constant 0 : index
    %c0_5 = arith.constant 0 : index
    %5 = vector.load %arg3[%c0_4, %c0_5] : memref<256x128xbf16, #tpu.memory_space<vmem>>, vector<256x128xbf16>
    %cst = arith.constant dense<0.000000e+00> : vector<256x128xf32>
    %6 = tpu.matmul %4, %5, %cst {dimension_numbers = #tpu.dot_dimension_numbers<[1], [0], [0], [1], [0, 0, 1, 1], [], []>} : vector<256x256xbf16>, vector<256x128xbf16>, vector<256x128xf32> -> vector<256x128xf32>
    %7 = arith.addf %3, %6 : vector<256x128xf32>
    %c0_6 = arith.constant 0 : index
    %c0_7 = arith.constant 0 : index
    %8 = vector.load %arg5[%c0_6, %c0_7] : memref<256x128xf32, #tpu.memory_space<vmem>>, vector<256x128xf32>
    tpu.vector_store %arg5[%c0_6, %c0_7], %7 {strides = array<i32>} : memref<256x128xf32, #tpu.memory_space<vmem>>, vector<256x128xf32>,
    %c2_i32 = arith.constant 2 : i32
    %9 = arith.cmpi eq, %arg1, %c2_i32 : i32
    %10 = arith.extui %9 : i1 to i32
    %c0_i32_8 = arith.constant 0 : i32
    %11 = arith.cmpi ne, %10, %c0_i32_8 : i32
    scf.if %11 {
      %c0_9 = arith.constant 0 : index
      %c0_10 = arith.constant 0 : index
      %12 = vector.load %arg5[%c0_9, %c0_10] : memref<256x128xf32, #tpu.memory_space<vmem>>, vector<256x128xf32>
      %c0_11 = arith.constant 0 : index
      %c0_12 = arith.constant 0 : index
      %13 = vector.load %arg4[%c0_11, %c0_12] : memref<256x128xf32, #tpu.memory_space<vmem>>, vector<256x128xf32>
      tpu.vector_store %arg4[%c0_11, %c0_12], %12 {strides = array<i32>} : memref<256x128xf32, #tpu.memory_space<vmem>>, vector<256x128xf32>,
    } else {
    }
    return
  }
  func.func @transform_0(%arg0: i32, %arg1: i32) -> (i32, i32) {
    %c0_i32 = arith.constant 0 : i32
    return %arg0, %arg1 : i32, i32
  }
  func.func @transform_1(%arg0: i32, %arg1: i32) -> (i32, i32) {
    %c0_i32 = arith.constant 0 : i32
    %c0_i32_0 = arith.constant 0 : i32
    return %arg1, %c0_i32 : i32, i32
  }
  func.func @transform_2(%arg0: i32, %arg1: i32) -> (i32, i32) {
    %c0_i32 = arith.constant 0 : i32
    %c0_i32_0 = arith.constant 0 : i32
    return %arg0, %c0_i32 : i32, i32
  }
}

</mosaic_0001>

<bundles_post_ra>
// kernel: tpu_custom_call.1
= control target key start
LH: loop header
LB: loop body
LE: loop exit
PB: predicated region body
PF: predicated region fallthrough
CT: control target
= control target key end

     0   :  { %s2105_s0 = inlined_call_operand.hbm [shape: bf16[768,768], index: 0, kind: input, shape index: {}]   ;;  %s2106_s1 = inlined_call_operand.hbm [shape: bf16[768,128], index: 1, kind: input, shape index: {}]   ;;  %s2107_s2 = inlined_call_operand.hbm [shape: f32[768,128], index: 2, kind: output, shape index: {}]  }
   0x1   :  { %2116 = sst [smem:[#allocation15_spill]] %s2105_s0 }
   0x2   :  { %2117 = sst [smem:[#allocation16_spill]] %s2107_s2 }
   0x3   :  { %7 = vsyncpa [#allocation4], 0 }
   0x4   :  { %9 = vsyncpa [#allocation4 + $0x1], 0 }
   0x5   :  { %10 = vsyncpa [#allocation7], 0 }
   0x6   :  { %12 = vsyncpa [#allocation7 + $0x1], 0 }
   0x7   :  { %13 = vsyncpa [#allocation5], 0 }
   0x8   :  { %15 = vsyncpa [#allocation5 + $0x1], 0  ;;  %s1672_s9 = smov 0   ;;  %s1674_s10 = smov 0  }
   0x9   :  { %s1676_s11 = smov 0   ;;  %s1678_s12 = smov 0  }
   0xa   :  { %s1680_s13 = smov 0   ;;  %s1682_s14 = smov 0  }
   0xb   :  { %s1684_s15 = smov 0   ;;  %s1686_s16 = smov 0  }
   0xc   :  { %s1688_s17 = smov 0   ;;  %s1690_s18 = smov 0  }
   0xd   :  { %s1692_s19 = smov 0   ;;  %s1694_s20 = smov 0  }
   0xe   :  { %s1696_s21 = smov 0   ;;  %s1698_s22 = smov 0  }
   0xf LB: > { %2118 = sst [smem:[#allocation12_spill]] %s1632_s19  ;;  %s30_s23 = sadd.s32 1, %s1636_s20  ;;  %s1644_s22 = sphi %s1698_s22, %s21_s22   ;;  %s1640_s21 = sphi %s1696_s21, %s2155_s21   ;;  %s1636_s20 = sphi %s1694_s20, %s2154_s20   ;;  %s1632_s19 = sphi %s1692_s19, %s2153_s19   ;;  %s1628_s18 = sphi %s1690_s18, %s2152_s18   ;;  %s1624_s17 = sphi %s1688_s17, %s2151_s17   ;;  %s1620_s16 = sphi %s1686_s16, %s2150_s16   ;;  %s1616_s15 = sphi %s1684_s15, %s2149_s15   ;;  %s1612_s14 = sphi %s1682_s14, %s2148_s14   ;;  %s1608_s13 = sphi %s1680_s13, %s2147_s13   ;;  %s1604_s12 = sphi %s1678_s12, %s2146_s12   ;;  %s1600_s11 = sphi %s1676_s11, %s2145_s11   ;;  %s1596_s10 = sphi %s1674_s10, %s2144_s10   ;;  %s1592_s9 = sphi %s1672_s9, %s2143_s9  }
  0x10   : > { %s33_s24 = sadd.s32 1, %s1640_s21  ;;  %p31_p0 = scmp.ge.s32.totalorder %s30_s23, 3 }
  0x11   : > { %s42_s25 = sadd.s32 1, %s1624_s17  ;;  %p49_p1 = scmp.ne.s32.totalorder %s1624_s17, %s1620_s16 }
  0x12   : > { %p2112_p2 = scmp.eq.s32.totalorder %s1644_s22, 0  ;;  %s2157_s23 = smov (%p31_p0, %s30_s23), 0 }
  0x13   : > { %2119 = sst [smem:[#allocation13_spill]] %s2157_s23  ;;  %s2159_s24 = smov (!%p31_p0, %s33_s24), %s1640_s21 }
  0x14   : > { %s1753_s26 = ssub.s32 %s1636_s20, %s2157_s23  ;;  %p1757_p3 = por %p2112_p2, %p49_p1 }
  0x15   : > { %p35_p4 = scmp.ge.s32.totalorder %s2159_s24, 3  ;;  %s94_s28 = sadd.s32 1, %s1600_s11 }
  0x16   : > { %p2111_p6 = scmp.lt.s32.totalorder %s1644_s22, 9  ;;  %s131_s29 = sand.u32 1, %s1624_s17  }
  0x17   : > { %s2161_s24 = smov (%p35_p4, %s2159_s24), 0  ;;  %s1033_s4 = sshll.u32 %s131_s29, 8 }
  0x18   : > { %2121 = sst [smem:[#allocation14_spill]] %s2161_s24  ;;  %s37_s30 = ssub.s32 %s1640_s21, %s2161_s24 }
  0x19   : > { %s39_s3 = sor.u32 %s1753_s26, %s37_s30  ;;  %p92_p7 = scmp.eq.s32.totalorder %s37_s30, 0 }
  0x1a   : > { %p40_p8 = scmp.eq.s32.totalorder %s39_s3, 0  ;;  %s1035_s7 = sshll.u32 %s1636_s20, 1 }
  0x1b   : > { %s1772_s5 = scalar_select %p92_p7, %s1600_s11, %s94_s28  }
  0x1c   : > { %s1775_s6 = scalar_select %p40_p8, %s1624_s17, %s42_s25  }
  0x1d   : > { %s1230_s8 = smul.u32 192, %s1640_s21  ;;  %s135_s23 = scalar_lea.vmem [#allocation3], %s1033_s4 }
  0x1e   : > { %s145_s2 = sshll.u32 %s135_s23, 4  ;;  %p1785_p9 = pnand %p2111_p6, %p1757_p3  ;;  %s1779_s2 = int_to_ptr.vmem [resolvable:$true] %s145_s2 }
  0x1f   : > { %s142_s30 = sadd.s32 %s1230_s8, %s1035_s7  ;;  %s2123_s0 = sld [smem:[#allocation15_spill]] }
  0x20   : > { %s1037_s3 = sshll.u32 %s142_s30, 6  ;;  %p1041_p10 = scmp.ge.s32.totalorder %s1644_s22, 1 }
  0x21   : > { %s1795_s23 = scalar_lea.sflag [#allocation4], %s131_s29  ;;  %p1436_p12 = pneg %p1785_p9 }
  0x25   : > { %s1792_s25 = scalar_lea.hbm %s2123_s0, %s1037_s3  ;;  %s1439_s24 = scalar_lea.hbm %s2123_s0, 36864 }
  0x26   : > { %s1434_s27 = scalar_lea.hbm %s1792_s25, 4096  ;;  %p1440_p1 = scmp.lt.u32.totalorder %s1792_s25, %s2123_s0 }
  0x27   : > { %p1435_p11 = scmp.ne.s32.totalorder %s1792_s25, %s1434_s27  ;;  %p1441_p3 = scmp.lt.u32.totalorder %s1439_s24, %s1434_s27 }
  0x28   : > { %p1443_p7 = scmp.lt.u32.totalorder %s1434_s27, %s1792_s25 }
  0x29   : > { %p1437_p13 = pnand %p1436_p12, %p1435_p11  ;;  %p1442_p4 = por %p1441_p3, %p1440_p1 }
  0x2b   : > { %p1438_p0 = pneg %p1437_p13  ;;  %p1444_p8 = por %p1443_p7, %p1442_p4 }
  0x2d   : > { %p1445_p6 = pnand %p1444_p8, %p1438_p0 }
  0x2f   : > { %1448 = shalt.err (!%p1445_p6)
}
  0x30   : > { %s1449_s29 = scalar_lea.vmem %s1779_s2, 4096  ;;  %s1646_s3 = smov [#allocation3]  }
  0x31   : > { %p1450_p11 = scmp.ne.s32.totalorder %s1779_s2, %s1449_s29  ;;  %s1454_s28 = sshll.u32 %s1646_s3, 4  ;;  %s1455_s28 = int_to_ptr.vmem [resolvable:$false] %s1454_s28 }
  0x32   : > { %s1456_s4 = scalar_lea.vmem %s1455_s28, 8192  ;;  %p1457_p5 = scmp.lt.s32.totalorder %s1779_s2, %s1455_s28 }
  0x33   : > { %p1452_p13 = pnand %p1450_p11, %p1436_p12  ;;  %p1458_p1 = scmp.lt.s32.totalorder %s1456_s4, %s1449_s29 }
  0x35   : > { %p1453_p2 = pneg %p1452_p13  ;;  %p1459_p3 = por %p1458_p1, %p1457_p5 }
  0x37   : > { %p1460_p4 = pnand %p1459_p3, %p1453_p2 }
  0x39   : > { %1463 = shalt.err (!%p1460_p4)
}
  0x3a   : > { %s1647_s27 = smov 384   ;;  %s1648_s7 = smov 128  }
  0x3b   : > { %s1649_s24 = smov 8   ;;  %p174_p2 = scmp.lt.s32.totalorder %s1644_s22, 10 }
  0x3c   : > { %1240 = dma.hbm_to_vmem [thread:$0]  (!%p1785_p9), %s1792_s25, 4096, %s1779_s2, %s1795_s23, %s1647_s27, %s1648_s7, %s1649_s24  }
  0x3d   : > { %p1826_p5 = pnand %p1041_p10, %p174_p2  ;;  %s1029_s30 = sadd.s32 4294967295, %s1644_s22  }
  0x3e   : > { %s1030_s29 = sadd.s32 4294967294, %s1644_s22   ;;  %p56_p6 = scmp.eq.s32.totalorder %s1029_s30, 0 }
  0x3f   : > { %p66_p12 = scmp.eq.s32.totalorder %s1753_s26, 0  ;;  %s68_s3 = sadd.s32 1, %s1612_s14 }
  0x40   : > { %p75_p0 = scmp.ne.s32.totalorder %s1612_s14, %s1608_s13  ;;  %p2125_p7 = scmp.ne.s32.totalorder %s1620_s16, %s1616_s15 }
  0x41   : > { %p81_p9 = scmp.ne.s32.totalorder %s1608_s13, %s1604_s12  ;;  %p2127_p10 = scmp.eq.s32.totalorder %s1644_s22, 0 }
  0x42   : > { %p1839_p8 = por %p56_p6, %p2125_p7  ;;  %p104_p1 = scmp.ne.s32.totalorder %s1600_s11, %s1596_s10 }
  0x43   : > { %s1846_s2 = scalar_select %p66_p12, %s1612_s14, %s68_s3  }
  0x44   : > { %s2126_s19 = scalar_select %p1839_p8, 1, 0 }
  0x45   : > { %p1850_p11 = por %p75_p0, %p2127_p10  ;;  %p1854_p13 = por %p81_p9, %p56_p6 }
  0x46   : > { %p105_p3 = scmp.eq.s32.totalorder %s1029_s30, 8  ;;  %p110_p4 = scmp.ne.s32.totalorder %s1596_s10, %s1592_s9 }
  0x47   : > { %s2129_s26 = scalar_select %p1854_p13, 1, 0 }
  0x48   : > { %p111_p2 = scmp.eq.s32.totalorder %s1030_s29, 8  ;;  %p1862_p7 = por %p105_p3, %p104_p1 }
  0x49   : > { %s155_s12 = sand.u32 1, %s1612_s14   ;;  %s1100_s4 = sshll.u32 %s1636_s20, 11 }
  0x4a   : > { %s2130_s15 = scalar_select %p1862_p7, 1, 0 }
  0x4b   : > { %p1867_p12 = por %p111_p2, %p110_p4  ;;  %s1038_s28 = sshll.u32 %s155_s12, 7 }
  0x4c   : > { %s1875_s24 = scalar_lea.hbm %s2106_s1, %s1100_s4  ;;  %s159_s30 = scalar_lea.vmem [#allocation6], %s1038_s28 }
  0x4d   : > { %s2131_s23 = scalar_select %p1867_p12, 1, 0 }
  0x4e   : > { %s166_s29 = sshll.u32 %s159_s30, 4  ;;  %p2132_p6 = scmp.lt.s32.totalorder %s1644_s22, 9  ;;  %s1885_s29 = int_to_ptr.vmem [resolvable:$true] %s166_s29 }
  0x4f   : > { %s1887_s0 = scalar_lea.sflag [#allocation7], %s155_s12  ;;  %s1464_s4 = scalar_lea.hbm %s1875_s24, 2048 }
  0x50   : > { %p1881_p0 = pnand %p2132_p6, %p1850_p11  ;;  %p1465_p9 = scmp.ne.s32.totalorder %s1875_s24, %s1464_s4 }
  0x51   : > { %s1469_s27 = scalar_lea.hbm %s2106_s1, 6144  ;;  %p1470_p11 = scmp.lt.u32.totalorder %s1875_s24, %s2106_s1 }
  0x52   : > { %p1466_p10 = pneg %p1881_p0  ;;  %p1471_p4 = scmp.lt.u32.totalorder %s1469_s27, %s1464_s4 }
  0x53   : > { %p1473_p6 = scmp.lt.u32.totalorder %s1464_s4, %s1875_s24 }
  0x54   : > { %p1467_p1 = pnand %p1466_p10, %p1465_p9  ;;  %p1472_p2 = por %p1471_p4, %p1470_p11 }
  0x56   : > { %p1468_p3 = pneg %p1467_p1  ;;  %p1474_p12 = por %p1473_p6, %p1472_p2 }
  0x58   : > { %p1475_p7 = pnand %p1474_p12, %p1468_p3 }
  0x5a   : > { %1478 = shalt.err (!%p1475_p7)
}
  0x5b   : > { %s1479_s12 = scalar_lea.vmem %s1885_s29, 2048  ;;  %s1650_s25 = smov [#allocation6]  }
  0x5c   : > { %p1480_p9 = scmp.ne.s32.totalorder %s1885_s29, %s1479_s12  ;;  %s1484_s28 = sshll.u32 %s1650_s25, 4  ;;  %s1485_s28 = int_to_ptr.vmem [resolvable:$false] %s1484_s28 }
  0x5d   : > { %s1486_s7 = scalar_lea.vmem %s1485_s28, 4096  ;;  %p1487_p8 = scmp.lt.s32.totalorder %s1885_s29, %s1485_s28 }
  0x5e   : > { %p1482_p1 = pnand %p1480_p9, %p1466_p10  ;;  %p1488_p11 = scmp.lt.s32.totalorder %s1486_s7, %s1479_s12 }
  0x60   : > { %p1483_p13 = pneg %p1482_p1  ;;  %p1489_p4 = por %p1488_p11, %p1487_p8 }
  0x62   : > { %p1490_p2 = pnand %p1489_p4, %p1483_p13 }
  0x64   : > { %1493 = shalt.err (!%p1490_p2)
}
  0x65   : > { %s1651_s4 = smov 64   ;;  %s1652_s27 = smov 4  }
  0x66   : > { %1243 = dma.hbm_to_vmem [thread:$0]  (!%p1881_p0), %s1875_s24, 2048, %s1885_s29, %s1887_s0, %s1651_s4, %s1651_s4, %s1652_s27  }
  0x67   : > { %178 = sbr.rel (%p1826_p5) target bundleno = 479 (0x1df), region = 28  ;;  %s180_s30 = sand.u32 (!%p1826_p5), 1, %s1620_s16  }
  0x68   : > { %s1042_s25 = sshll.u32 (!%p1826_p5), %s180_s30, 8  ;;  %s181_s28 = scalar_lea.sflag (!%p1826_p5), [#allocation4], %s180_s30 }
  0x69   : > { %s1918_s12 = scalar_lea.vmem (!%p1826_p5), [#allocation3], %s1042_s25  ;;  %p2134_p8 = scmp.ne.s32.totalorder (!%p1826_p5), %s2126_s19, 0 }
  0x6e   : > { %1579 = dma.done.wait (%p2134_p8), %s181_s28, 4096  }
  0x6f   : > { %1581 = vsyncadd (%p2134_p8), %s181_s28, 4294963200  ;;  %s189_s7 = sand.u32 1, %s1608_s13   ;;  %p2135_p5 = scmp.ne.s32.totalorder %s2129_s26, 0 }
  0x70   : > { %s1043_s3 = sshll.u32 %s189_s7, 7  ;;  %s190_s0 = scalar_lea.sflag [#allocation7], %s189_s7 }
  0x71   : > { %s1925_s24 = scalar_lea.vmem [#allocation6], %s1043_s3 }
  0x72   : > { %1583 = dma.done.wait (%p2135_p5), %s190_s0, 2048  }
  0x73   : > { %1585 = vsyncadd (%p2135_p5), %s190_s0, 4294965248  ;;  %s216_s8 = sand.u32 1, %s1596_s10   ;;  %p1045_p13 = scmp.ne.s32.totalorder %s1628_s18, 0 }
  0x74   : > { %s1044_s29 = sshll.u32 %s216_s8, 8  ;;  %v1653_v0 = vmov (!%p1045_p13), 0.0  }
  0x75   : > { %s1934_s4 = scalar_lea.vmem [#allocation8], %s1044_s29  ;;  %227 = sbr.rel (%p1045_p13) target bundleno = 133 (0x85), region = 40  ;;  %228 = vst [vmem:[#allocation2] sm:$0xff] (!%p1045_p13), %v1653_v0  ;;  %229 = vst [vmem:[#allocation2 + $0x8] sm:$0xff] (!%p1045_p13), %v1653_v0 }
  0x76   : > { %230 = vst [vmem:[#allocation2 + $0x10] sm:$0xff] (!%p1045_p13), %v1653_v0  ;;  %231 = vst [vmem:[#allocation2 + $0x18] sm:$0xff] (!%p1045_p13), %v1653_v0 }
  0x77   : > { %232 = vst [vmem:[#allocation2 + $0x20] sm:$0xff] (!%p1045_p13), %v1653_v0  ;;  %233 = vst [vmem:[#allocation2 + $0x28] sm:$0xff] (!%p1045_p13), %v1653_v0 }
  0x78   : > { %234 = vst [vmem:[#allocation2 + $0x30] sm:$0xff] (!%p1045_p13), %v1653_v0  ;;  %235 = vst [vmem:[#allocation2 + $0x38] sm:$0xff] (!%p1045_p13), %v1653_v0 }
  0x79   : > { %236 = vst [vmem:[#allocation2 + $0x40] sm:$0xff] (!%p1045_p13), %v1653_v0  ;;  %237 = vst [vmem:[#allocation2 + $0x48] sm:$0xff] (!%p1045_p13), %v1653_v0 }
  0x7a   : > { %238 = vst [vmem:[#allocation2 + $0x50] sm:$0xff] (!%p1045_p13), %v1653_v0  ;;  %239 = vst [vmem:[#allocation2 + $0x58] sm:$0xff] (!%p1045_p13), %v1653_v0 }
  0x7b   : > { %240 = vst [vmem:[#allocation2 + $0x60] sm:$0xff] (!%p1045_p13), %v1653_v0  ;;  %241 = vst [vmem:[#allocation2 + $0x68] sm:$0xff] (!%p1045_p13), %v1653_v0 }
  0x7c   : > { %242 = vst [vmem:[#allocation2 + $0x70] sm:$0xff] %v1653_v0  ;;  %243 = vst [vmem:[#allocation2 + $0x78] sm:$0xff] %v1653_v0 }
  0x7d   : > { %244 = vst [vmem:[#allocation2 + $0x80] sm:$0xff] %v1653_v0  ;;  %245 = vst [vmem:[#allocation2 + $0x88] sm:$0xff] %v1653_v0 }
  0x7e   : > { %246 = vst [vmem:[#allocation2 + $0x90] sm:$0xff] %v1653_v0  ;;  %247 = vst [vmem:[#allocation2 + $0x98] sm:$0xff] %v1653_v0 }
  0x7f   : > { %248 = vst [vmem:[#allocation2 + $0xa0] sm:$0xff] %v1653_v0  ;;  %249 = vst [vmem:[#allocation2 + $0xa8] sm:$0xff] %v1653_v0 }
  0x80   : > { %250 = vst [vmem:[#allocation2 + $0xb0] sm:$0xff] %v1653_v0  ;;  %251 = vst [vmem:[#allocation2 + $0xb8] sm:$0xff] %v1653_v0 }
  0x81   : > { %252 = vst [vmem:[#allocation2 + $0xc0] sm:$0xff] %v1653_v0  ;;  %253 = vst [vmem:[#allocation2 + $0xc8] sm:$0xff] %v1653_v0 }
  0x82   : > { %254 = vst [vmem:[#allocation2 + $0xd0] sm:$0xff] %v1653_v0  ;;  %255 = vst [vmem:[#allocation2 + $0xd8] sm:$0xff] %v1653_v0 }
  0x83   : > { %256 = vst [vmem:[#allocation2 + $0xe0] sm:$0xff] %v1653_v0  ;;  %257 = vst [vmem:[#allocation2 + $0xe8] sm:$0xff] %v1653_v0 }
  0x84   : > { %258 = vst [vmem:[#allocation2 + $0xf0] sm:$0xff] %v1653_v0  ;;  %259 = vst [vmem:[#allocation2 + $0xf8] sm:$0xff] %v1653_v0 }
  0x85 PF: > { %v1370_v1 = vld [vmem:[%s1925_s24 + $0x40] sm:$0xff]   ;;  %v1372_v3 = vld [vmem:[%s1925_s24 + $0x48] sm:$0xff]   ;;  %v1374_v5 = vld [vmem:[%s1925_s24 + $0x50] sm:$0xff]   ;;  %p1094_p7 = scmp.ne.s32.totalorder %s1628_s18, 2 }
  0x86   : > { %v1371_v2 = vld [vmem:[%s1925_s24] sm:$0xff]   ;;  %1102 = vmatprep.subr.bf16.mxu0 %v1370_v1  ;;  %1214 = vmatprep.subr.bf16.mxu1 %v1370_v1  ;;  %v1373_v4 = vld [vmem:[%s1925_s24 + $0x8] sm:$0xff]   ;;  %v1375_v6 = vld [vmem:[%s1925_s24 + $0x10] sm:$0xff]  }
  0x87   : > { %1103 = vmatpush3.bf16.msra.mxu0 %v1371_v2  ;;  %1222 = vmatpush3.bf16.msra.mxu1 %v1371_v2  ;;  %v1376_v7 = vld [vmem:[%s1925_s24 + $0x58] sm:$0xff]   ;;  %v1378_v9 = vld [vmem:[%s1925_s24 + $0x60] sm:$0xff]   ;;  %v1380_v11 = vld [vmem:[%s1925_s24 + $0x68] sm:$0xff]  }
  0x88   : > { %1104 = vmatprep.subr.bf16.mxu0 %v1372_v3  ;;  %1215 = vmatprep.subr.bf16.mxu1 %v1372_v3  ;;  %v1377_v8 = vld [vmem:[%s1925_s24 + $0x18] sm:$0xff]   ;;  %v1379_v10 = vld [vmem:[%s1925_s24 + $0x20] sm:$0xff]   ;;  %v1381_v14 = vld [vmem:[%s1925_s24 + $0x28] sm:$0xff]  }
  0x89   : > { %v1388_v12 = vld [vmem:[%s1918_s12 + $0x4] ss:$8 sps:$4 sm:$0xff]   ;;  %v1382_v15 = vld [vmem:[%s1925_s24 + $0x70] sm:$0xff]   ;;  %v1384_v17 = vld [vmem:[%s1925_s24 + $0x78] sm:$0xff]  }
  0x8a   : > { %v1391_v13 = vld [vmem:[%s1918_s12 + $0x84] ss:$8 sps:$4 sm:$0xff]   ;;  %644 = vmatprep.mubr.bf16.mxu0 %v1388_v12  ;;  %v1383_v16 = vld [vmem:[%s1925_s24 + $0x30] sm:$0xff]   ;;  %v1385_v18 = vld [vmem:[%s1925_s24 + $0x38] sm:$0xff]  }
  0x8b   : > { %1105 = vmatpush3.bf16.msra.mxu0 %v1373_v4  ;;  %1223 = vmatpush3.bf16.msra.mxu1 %v1373_v4  ;;  %v1386_v19 = vld [vmem:[%s1918_s12] ss:$8 sps:$4 sm:$0xff]   ;;  %v1392_v21 = vld [vmem:[%s1918_s12 + $0x14] ss:$8 sps:$4 sm:$0xff]   ;;  %v1396_v23 = vld [vmem:[%s1918_s12 + $0x10] ss:$8 sps:$4 sm:$0xff]  }
  0x8c   : > { %1106 = vmatprep.subr.bf16.mxu0 %v1374_v5  ;;  %1216 = vmatprep.subr.bf16.mxu1 %v1374_v5  ;;  %v1389_v20 = vld [vmem:[%s1918_s12 + $0x80] ss:$8 sps:$4 sm:$0xff]   ;;  %v1394_v22 = vld [vmem:[%s1918_s12 + $0x94] ss:$8 sps:$4 sm:$0xff]   ;;  %v1397_v24 = vld [vmem:[%s1918_s12 + $0x90] ss:$8 sps:$4 sm:$0xff]  }
  0x8d   : > { %708 = vmatprep.mubr.bf16.mxu1 %v1391_v13  ;;  %v1398_v25 = vld [vmem:[%s1918_s12 + $0x24] ss:$8 sps:$4 sm:$0xff]   ;;  %v1402_v27 = vld [vmem:[%s1918_s12 + $0x20] ss:$8 sps:$4 sm:$0xff]   ;;  %v1404_v29 = vld [vmem:[%s1918_s12 + $0x34] ss:$8 sps:$4 sm:$0xff]  }
  0x8e   : > { %v1400_v26 = vld [vmem:[%s1918_s12 + $0xa4] ss:$8 sps:$4 sm:$0xff]   ;;  %v1403_v28 = vld [vmem:[%s1918_s12 + $0xa0] ss:$8 sps:$4 sm:$0xff]   ;;  %v1406_v30 = vld [vmem:[%s1918_s12 + $0xb4] ss:$8 sps:$4 sm:$0xff]  }
  0x8f   : > { %1107 = vmatpush3.bf16.msra.mxu0 %v1375_v6  ;;  %1224 = vmatpush3.bf16.msra.mxu1 %v1375_v6  ;;  %v1408_v31 = vld [vmem:[%s1918_s12 + $0x30] ss:$8 sps:$4 sm:$0xff]   ;;  %v1410_v33 = vld [vmem:[%s1918_s12 + $0x44] ss:$8 sps:$4 sm:$0xff]   ;;  %v1414_v35 = vld [vmem:[%s1918_s12 + $0x40] ss:$8 sps:$4 sm:$0xff]  }
  0x90   : > { %1108 = vmatprep.subr.bf16.mxu0 %v1376_v7  ;;  %1217 = vmatprep.subr.bf16.mxu1 %v1376_v7  ;;  %v1409_v32 = vld [vmem:[%s1918_s12 + $0xb0] ss:$8 sps:$4 sm:$0xff]   ;;  %v1412_v34 = vld [vmem:[%s1918_s12 + $0xc4] ss:$8 sps:$4 sm:$0xff]   ;;  %v1415_v36 = vld [vmem:[%s1918_s12 + $0xc0] ss:$8 sps:$4 sm:$0xff]  }
  0x91   : > { %v1416_v37 = vld [vmem:[%s1918_s12 + $0x54] ss:$8 sps:$4 sm:$0xff]   ;;  %v1420_v39 = vld [vmem:[%s1918_s12 + $0x50] ss:$8 sps:$4 sm:$0xff]   ;;  %v1422_v41 = vld [vmem:[%s1918_s12 + $0x64] ss:$8 sps:$4 sm:$0xff]  }
  0x92   : > { %v1418_v38 = vld [vmem:[%s1918_s12 + $0xd4] ss:$8 sps:$4 sm:$0xff]   ;;  %v1421_v40 = vld [vmem:[%s1918_s12 + $0xd0] ss:$8 sps:$4 sm:$0xff]   ;;  %v1424_v42 = vld [vmem:[%s1918_s12 + $0xe4] ss:$8 sps:$4 sm:$0xff]  }
  0x93   : > { %1109 = vmatpush3.bf16.msra.mxu0 %v1377_v8  ;;  %1225 = vmatpush3.bf16.msra.mxu1 %v1377_v8  ;;  %v1426_v43 = vld [vmem:[%s1918_s12 + $0x60] ss:$8 sps:$4 sm:$0xff]   ;;  %v1428_v45 = vld [vmem:[%s1918_s12 + $0x74] ss:$8 sps:$4 sm:$0xff]   ;;  %v1432_v47 = vld [vmem:[%s1918_s12 + $0x70] ss:$8 sps:$4 sm:$0xff]  }
  0x94   : > { %1110 = vmatprep.subr.bf16.mxu0 %v1378_v9  ;;  %1218 = vmatprep.subr.bf16.mxu1 %v1378_v9  ;;  %v1427_v44 = vld [vmem:[%s1918_s12 + $0xe0] ss:$8 sps:$4 sm:$0xff]   ;;  %v1430_v46 = vld [vmem:[%s1918_s12 + $0xf4] ss:$8 sps:$4 sm:$0xff]   ;;  %v1433_v48 = vld [vmem:[%s1918_s12 + $0xf0] ss:$8 sps:$4 sm:$0xff]  }
  0x95   : > { %v260_v51 = vld [vmem:[#allocation2] sm:$0xff]  ;;  %v261_v59 = vld [vmem:[#allocation2 + $0x8] sm:$0xff]  ;;  %v262_v7 = vld [vmem:[#allocation2 + $0x10] sm:$0xff] }
  0x96   : > { %v276_v53 = vld [vmem:[#allocation2 + $0x80] sm:$0xff]  ;;  %v277_v61 = vld [vmem:[#allocation2 + $0x88] sm:$0xff]  ;;  %v278_v9 = vld [vmem:[#allocation2 + $0x90] sm:$0xff] }
  0x97   : > { %1111 = vmatpush3.bf16.msra.mxu0 %v1379_v10  ;;  %1226 = vmatpush3.bf16.msra.mxu1 %v1379_v10 }
  0x98   : > { %1112 = vmatprep.subr.bf16.mxu0 %v1380_v11  ;;  %1219 = vmatprep.subr.bf16.mxu1 %v1380_v11 }
  0x9b   : > { %1113 = vmatpush3.bf16.msra.mxu0 %v1381_v14  ;;  %1227 = vmatpush3.bf16.msra.mxu1 %v1381_v14 }
  0x9c   : > { %1114 = vmatprep.subr.bf16.mxu0 %v1382_v15  ;;  %1220 = vmatprep.subr.bf16.mxu1 %v1382_v15  ;;  %v263_v15 = vld [vmem:[#allocation2 + $0x18] sm:$0xff] }
  0x9f   : > { %1115 = vmatpush3.bf16.msra.mxu0 %v1383_v16  ;;  %1228 = vmatpush3.bf16.msra.mxu1 %v1383_v16 }
  0xa0   : > { %1116 = vmatprep.subr.bf16.mxu0 %v1384_v17  ;;  %1221 = vmatprep.subr.bf16.mxu1 %v1384_v17  ;;  %v279_v17 = vld [vmem:[#allocation2 + $0x98] sm:$0xff] }
  0xa3   : > { %1117 = vmatpush3.bf16.msra.mxu0 %v1385_v18  ;;  %1229 = vmatpush3.bf16.msra.mxu1 %v1385_v18 }
  0xa6   : > { %645 = vmatmul.mubr.bf16.vlgmr.msra.gmra.mrb[0].mxu0 %v1386_v19  ;;  %709 = vmatmul.mubr.bf16.vlgmr.msra.gmra.mrb[0].mxu1 %v1389_v20 }
  0xa7   : > { %652 = vmatprep.mubr.bf16.mxu0 %v1392_v21  ;;  %716 = vmatprep.mubr.bf16.mxu1 %v1394_v22 }
  0xae   : > { %653 = vmatmul.mubr.bf16.gmra.mrb[4].mxu0 %v1396_v23  ;;  %717 = vmatmul.mubr.bf16.gmra.mrb[4].mxu1 %v1397_v24 }
  0xaf   : > { %660 = vmatprep.mubr.bf16.mxu0 %v1398_v25  ;;  %724 = vmatprep.mubr.bf16.mxu1 %v1400_v26 }
  0xb6   : > { %661 = vmatmul.mubr.bf16.gmra.mrb[8].mxu0 %v1402_v27  ;;  %725 = vmatmul.mubr.bf16.gmra.mrb[8].mxu1 %v1403_v28  ;;  %v264_v27 = vld [vmem:[#allocation2 + $0x20] sm:$0xff] }
  0xb7   : > { %668 = vmatprep.mubr.bf16.mxu0 %v1404_v29  ;;  %732 = vmatprep.mubr.bf16.mxu1 %v1406_v30  ;;  %v280_v29 = vld [vmem:[#allocation2 + $0xa0] sm:$0xff] }
  0xbe   : > { %669 = vmatmul.mubr.bf16.gmra.mrb[12].mxu0 %v1408_v31  ;;  %733 = vmatmul.mubr.bf16.gmra.mrb[12].mxu1 %v1409_v32 }
  0xbf   : > { %676 = vmatprep.mubr.bf16.mxu0 %v1410_v33  ;;  %740 = vmatprep.mubr.bf16.mxu1 %v1412_v34 }
  0xc6   : > { %677 = vmatmul.mubr.bf16.gmra.mrb[16].mxu0 %v1414_v35  ;;  %741 = vmatmul.mubr.bf16.gmra.mrb[16].mxu1 %v1415_v36  ;;  %v265_v35 = vld [vmem:[#allocation2 + $0x28] sm:$0xff] }
  0xc7   : > { %684 = vmatprep.mubr.bf16.mxu0 %v1416_v37  ;;  %748 = vmatprep.mubr.bf16.mxu1 %v1418_v38  ;;  %v281_v37 = vld [vmem:[#allocation2 + $0xa8] sm:$0xff] }
  0xce   : > { %685 = vmatmul.mubr.bf16.gmra.mrb[20].mxu0 %v1420_v39  ;;  %749 = vmatmul.mubr.bf16.gmra.mrb[20].mxu1 %v1421_v40 }
  0xcf   : > { %692 = vmatprep.mubr.bf16.mxu0 %v1422_v41  ;;  %756 = vmatprep.mubr.bf16.mxu1 %v1424_v42 }
  0xd6   : > { %693 = vmatmul.mubr.bf16.gmra.mrb[24].mxu0 %v1426_v43  ;;  %757 = vmatmul.mubr.bf16.gmra.mrb[24].mxu1 %v1427_v44 }
  0xd7   : > { %700 = vmatprep.mubr.bf16.mxu0 %v1428_v45  ;;  %764 = vmatprep.mubr.bf16.mxu1 %v1430_v46 }
  0xde   : > { %701 = vmatmul.mubr.bf16.gmra.mrb[28].mxu0 %v1432_v47  ;;  %765 = vmatmul.mubr.bf16.gmra.mrb[28].mxu1 %v1433_v48  ;;  %v266_v47 = vld [vmem:[#allocation2 + $0x30] sm:$0xff] }
 0x179   : > { %v1118_v49 = vpop.f32.mrb[0].mxu0  ;;  %v1166_v50 = vpop.f32.mrb[0].mxu1 }
 0x17a   : > { %v1119_v52 = vpop.f32.mrb[1].mxu0  ;;  %v1167_v54 = vpop.f32.mrb[1].mxu1 }
 0x17b   : > { %v1120_v55 = vadd.f32 %v1119_v52, %v1118_v49  ;;  %v1168_v56 = vadd.f32 %v1167_v54, %v1166_v50  ;;  %v1121_v57 = vpop.f32.mrb[2].mxu0  ;;  %v1169_v58 = vpop.f32.mrb[2].mxu1  ;;  %v282_v49 = vld [vmem:[#allocation2 + $0xb0] sm:$0xff] }
 0x17c   : > { %v1122_v60 = vpop.f32.mrb[3].mxu0  ;;  %v1170_v62 = vpop.f32.mrb[3].mxu1 }
 0x17d   : > { %v773_v63 = vadd.f32 %v1120_v55, %v260_v51  ;;  %v789_v0 = vadd.f32 %v1168_v56, %v276_v53  ;;  %v1123_v1 = vadd.f32 %v1122_v60, %v1121_v57  ;;  %v1171_v2 = vadd.f32 %v1170_v62, %v1169_v58  ;;  %v267_v55 = vld [vmem:[#allocation2 + $0x38] sm:$0xff] }
 0x17e   : > { %v283_v57 = vld [vmem:[#allocation2 + $0xb8] sm:$0xff] }
 0x17f   : > { %805 = vst [vmem:[#allocation2] sm:$0xff] %v773_v63  ;;  %821 = vst [vmem:[#allocation2 + $0x80] sm:$0xff] %v789_v0  ;;  %v774_v3 = vadd.f32 %v1123_v1, %v261_v59  ;;  %v790_v4 = vadd.f32 %v1171_v2, %v277_v61 }
 0x181   : > { %806 = vst [vmem:[#allocation2 + $0x8] sm:$0xff] %v774_v3  ;;  %822 = vst [vmem:[#allocation2 + $0x88] sm:$0xff] %v790_v4  ;;  %v1124_v5 = vpop.f32.mrb[4].mxu0  ;;  %v1172_v6 = vpop.f32.mrb[4].mxu1  ;;  %v268_v3 = vld [vmem:[#allocation2 + $0x40] sm:$0xff] }
 0x182   : > { %v1125_v8 = vpop.f32.mrb[5].mxu0  ;;  %v1173_v10 = vpop.f32.mrb[5].mxu1 }
 0x183   : > { %v1126_v11 = vadd.f32 %v1125_v8, %v1124_v5  ;;  %v1174_v12 = vadd.f32 %v1173_v10, %v1172_v6  ;;  %v1127_v13 = vpop.f32.mrb[6].mxu0  ;;  %v1175_v14 = vpop.f32.mrb[6].mxu1  ;;  %v284_v5 = vld [vmem:[#allocation2 + $0xc0] sm:$0xff] }
 0x184   : > { %v1128_v16 = vpop.f32.mrb[7].mxu0  ;;  %v1176_v18 = vpop.f32.mrb[7].mxu1 }
 0x185   : > { %v775_v19 = vadd.f32 %v1126_v11, %v262_v7  ;;  %v791_v20 = vadd.f32 %v1174_v12, %v278_v9  ;;  %v1129_v21 = vadd.f32 %v1128_v16, %v1127_v13  ;;  %v1177_v22 = vadd.f32 %v1176_v18, %v1175_v14  ;;  %v269_v11 = vld [vmem:[#allocation2 + $0x48] sm:$0xff] }
 0x186   : > { %v285_v13 = vld [vmem:[#allocation2 + $0xc8] sm:$0xff] }
 0x187   : > { %807 = vst [vmem:[#allocation2 + $0x10] sm:$0xff] %v775_v19  ;;  %823 = vst [vmem:[#allocation2 + $0x90] sm:$0xff] %v791_v20  ;;  %v776_v23 = vadd.f32 %v1129_v21, %v263_v15  ;;  %v792_v24 = vadd.f32 %v1177_v22, %v279_v17 }
 0x189   : > { %808 = vst [vmem:[#allocation2 + $0x18] sm:$0xff] %v776_v23  ;;  %824 = vst [vmem:[#allocation2 + $0x98] sm:$0xff] %v792_v24  ;;  %v1130_v25 = vpop.f32.mrb[8].mxu0  ;;  %v1178_v26 = vpop.f32.mrb[8].mxu1  ;;  %v270_v23 = vld [vmem:[#allocation2 + $0x50] sm:$0xff] }
 0x18a   : > { %v1131_v28 = vpop.f32.mrb[9].mxu0  ;;  %v1179_v30 = vpop.f32.mrb[9].mxu1 }
 0x18b   : > { %v1132_v31 = vadd.f32 %v1131_v28, %v1130_v25  ;;  %v1180_v32 = vadd.f32 %v1179_v30, %v1178_v26  ;;  %v1133_v33 = vpop.f32.mrb[10].mxu0  ;;  %v1181_v34 = vpop.f32.mrb[10].mxu1  ;;  %v286_v25 = vld [vmem:[#allocation2 + $0xd0] sm:$0xff] }
 0x18c   : > { %v1134_v36 = vpop.f32.mrb[11].mxu0  ;;  %v1182_v38 = vpop.f32.mrb[11].mxu1 }
 0x18d   : > { %v777_v39 = vadd.f32 %v1132_v31, %v264_v27  ;;  %v793_v40 = vadd.f32 %v1180_v32, %v280_v29  ;;  %v1135_v41 = vadd.f32 %v1134_v36, %v1133_v33  ;;  %v1183_v42 = vadd.f32 %v1182_v38, %v1181_v34  ;;  %v271_v31 = vld [vmem:[#allocation2 + $0x58] sm:$0xff] }
 0x18e   : > { %v287_v33 = vld [vmem:[#allocation2 + $0xd8] sm:$0xff] }
 0x18f   : > { %809 = vst [vmem:[#allocation2 + $0x20] sm:$0xff] %v777_v39  ;;  %825 = vst [vmem:[#allocation2 + $0xa0] sm:$0xff] %v793_v40  ;;  %v778_v43 = vadd.f32 %v1135_v41, %v265_v35  ;;  %v794_v44 = vadd.f32 %v1183_v42, %v281_v37 }
 0x191   : > { %810 = vst [vmem:[#allocation2 + $0x28] sm:$0xff] %v778_v43  ;;  %826 = vst [vmem:[#allocation2 + $0xa8] sm:$0xff] %v794_v44  ;;  %v1136_v45 = vpop.f32.mrb[12].mxu0  ;;  %v1184_v46 = vpop.f32.mrb[12].mxu1  ;;  %v272_v43 = vld [vmem:[#allocation2 + $0x60] sm:$0xff] }
 0x192   : > { %v1137_v48 = vpop.f32.mrb[13].mxu0  ;;  %v1185_v50 = vpop.f32.mrb[13].mxu1 }
 0x193   : > { %v1138_v51 = vadd.f32 %v1137_v48, %v1136_v45  ;;  %v1186_v52 = vadd.f32 %v1185_v50, %v1184_v46  ;;  %v1139_v53 = vpop.f32.mrb[14].mxu0  ;;  %v1187_v54 = vpop.f32.mrb[14].mxu1  ;;  %v288_v45 = vld [vmem:[#allocation2 + $0xe0] sm:$0xff] }
 0x194   : > { %v1140_v56 = vpop.f32.mrb[15].mxu0  ;;  %v1188_v58 = vpop.f32.mrb[15].mxu1 }
 0x195   : > { %v779_v59 = vadd.f32 %v1138_v51, %v266_v47  ;;  %v795_v60 = vadd.f32 %v1186_v52, %v282_v49  ;;  %v1141_v61 = vadd.f32 %v1140_v56, %v1139_v53  ;;  %v1189_v62 = vadd.f32 %v1188_v58, %v1187_v54  ;;  %v273_v51 = vld [vmem:[#allocation2 + $0x68] sm:$0xff] }
 0x196   : > { %v289_v53 = vld [vmem:[#allocation2 + $0xe8] sm:$0xff] }
 0x197   : > { %811 = vst [vmem:[#allocation2 + $0x30] sm:$0xff] %v779_v59  ;;  %827 = vst [vmem:[#allocation2 + $0xb0] sm:$0xff] %v795_v60  ;;  %v780_v63 = vadd.f32 %v1141_v61, %v267_v55  ;;  %v796_v0 = vadd.f32 %v1189_v62, %v283_v57 }
 0x199   : > { %812 = vst [vmem:[#allocation2 + $0x38] sm:$0xff] %v780_v63  ;;  %828 = vst [vmem:[#allocation2 + $0xb8] sm:$0xff] %v796_v0  ;;  %v1142_v1 = vpop.f32.mrb[16].mxu0  ;;  %v1190_v2 = vpop.f32.mrb[16].mxu1  ;;  %v274_v63 = vld [vmem:[#allocation2 + $0x70] sm:$0xff] }
 0x19a   : > { %v1143_v4 = vpop.f32.mrb[17].mxu0  ;;  %v1191_v6 = vpop.f32.mrb[17].mxu1 }
 0x19b   : > { %v1144_v7 = vadd.f32 %v1143_v4, %v1142_v1  ;;  %v1192_v8 = vadd.f32 %v1191_v6, %v1190_v2  ;;  %v1145_v9 = vpop.f32.mrb[18].mxu0  ;;  %v1193_v10 = vpop.f32.mrb[18].mxu1  ;;  %v290_v1 = vld [vmem:[#allocation2 + $0xf0] sm:$0xff] }
 0x19c   : > { %v1146_v12 = vpop.f32.mrb[19].mxu0  ;;  %v1194_v14 = vpop.f32.mrb[19].mxu1 }
 0x19d   : > { %v781_v15 = vadd.f32 %v1144_v7, %v268_v3  ;;  %v797_v16 = vadd.f32 %v1192_v8, %v284_v5  ;;  %v1147_v17 = vadd.f32 %v1146_v12, %v1145_v9  ;;  %v1195_v18 = vadd.f32 %v1194_v14, %v1193_v10  ;;  %v275_v7 = vld [vmem:[#allocation2 + $0x78] sm:$0xff] }
 0x19e   : > { %v291_v9 = vld [vmem:[#allocation2 + $0xf8] sm:$0xff] }
 0x19f   : > { %813 = vst [vmem:[#allocation2 + $0x40] sm:$0xff] %v781_v15  ;;  %829 = vst [vmem:[#allocation2 + $0xc0] sm:$0xff] %v797_v16  ;;  %v782_v19 = vadd.f32 %v1147_v17, %v269_v11  ;;  %v798_v20 = vadd.f32 %v1195_v18, %v285_v13  ;;  %v841_v17 = vld [vmem:[#allocation2] sm:$0xff] (!%p1094_p7)  ;;  %v842_v18 = vld [vmem:[#allocation2 + $0x8] sm:$0xff] (!%p1094_p7) }
 0x1a0   : > { %873 = vst [vmem:[%s1934_s4] sm:$0xff] (!%p1094_p7), %v841_v17  ;;  %874 = vst [vmem:[%s1934_s4 + $0x8] sm:$0xff] (!%p1094_p7), %v842_v18 }
 0x1a1   : > { %814 = vst [vmem:[#allocation2 + $0x48] sm:$0xff] %v782_v19  ;;  %830 = vst [vmem:[#allocation2 + $0xc8] sm:$0xff] %v798_v20  ;;  %v1148_v21 = vpop.f32.mrb[20].mxu0  ;;  %v1196_v22 = vpop.f32.mrb[20].mxu1  ;;  %v843_v19 = vld [vmem:[#allocation2 + $0x10] sm:$0xff] (!%p1094_p7)  ;;  %v844_v20 = vld [vmem:[#allocation2 + $0x18] sm:$0xff] (!%p1094_p7) }
 0x1a2   : > { %v1149_v24 = vpop.f32.mrb[21].mxu0  ;;  %v1197_v26 = vpop.f32.mrb[21].mxu1  ;;  %875 = vst [vmem:[%s1934_s4 + $0x10] sm:$0xff] (!%p1094_p7), %v843_v19  ;;  %876 = vst [vmem:[%s1934_s4 + $0x18] sm:$0xff] (!%p1094_p7), %v844_v20 }
 0x1a3   : > { %v1150_v27 = vadd.f32 %v1149_v24, %v1148_v21  ;;  %v1198_v28 = vadd.f32 %v1197_v26, %v1196_v22  ;;  %v1151_v29 = vpop.f32.mrb[22].mxu0  ;;  %v1199_v30 = vpop.f32.mrb[22].mxu1  ;;  %v845_v21 = vld [vmem:[#allocation2 + $0x20] sm:$0xff] (!%p1094_p7)  ;;  %v846_v22 = vld [vmem:[#allocation2 + $0x28] sm:$0xff] (!%p1094_p7)  ;;  %v848_v24 = vld [vmem:[#allocation2 + $0x38] sm:$0xff] (!%p1094_p7) }
 0x1a4   : > { %v1152_v32 = vpop.f32.mrb[23].mxu0  ;;  %v1200_v34 = vpop.f32.mrb[23].mxu1  ;;  %877 = vst [vmem:[%s1934_s4 + $0x20] sm:$0xff] (!%p1094_p7), %v845_v21  ;;  %878 = vst [vmem:[%s1934_s4 + $0x28] sm:$0xff] (!%p1094_p7), %v846_v22 }
 0x1a5   : > { %v783_v35 = vadd.f32 %v1150_v27, %v270_v23  ;;  %v799_v36 = vadd.f32 %v1198_v28, %v286_v25  ;;  %v1153_v37 = vadd.f32 %v1152_v32, %v1151_v29  ;;  %v1201_v38 = vadd.f32 %v1200_v34, %v1199_v30  ;;  %v847_v23 = vld [vmem:[#allocation2 + $0x30] sm:$0xff] (!%p1094_p7)  ;;  %880 = vst [vmem:[%s1934_s4 + $0x38] sm:$0xff] (!%p1094_p7), %v848_v24  ;;  %v858_v34 = vld [vmem:[#allocation2 + $0x88] sm:$0xff] (!%p1094_p7) }
 0x1a6   : > { %v849_v25 = vld [vmem:[#allocation2 + $0x40] sm:$0xff] (!%p1094_p7)  ;;  %879 = vst [vmem:[%s1934_s4 + $0x30] sm:$0xff] (!%p1094_p7), %v847_v23  ;;  %890 = vst [vmem:[%s1934_s4 + $0x88] sm:$0xff] (!%p1094_p7), %v858_v34 }
 0x1a7   : > { %815 = vst [vmem:[#allocation2 + $0x50] sm:$0xff] %v783_v35  ;;  %831 = vst [vmem:[#allocation2 + $0xd0] sm:$0xff] %v799_v36  ;;  %v784_v39 = vadd.f32 %v1153_v37, %v271_v31  ;;  %v800_v40 = vadd.f32 %v1201_v38, %v287_v33  ;;  %v857_v33 = vld [vmem:[#allocation2 + $0x80] sm:$0xff] (!%p1094_p7)  ;;  %v859_v35 = vld [vmem:[#allocation2 + $0x90] sm:$0xff] (!%p1094_p7) }
 0x1a8   : > { %881 = vst [vmem:[%s1934_s4 + $0x40] sm:$0xff] (!%p1094_p7), %v849_v25  ;;  %v850_v26 = vld [vmem:[#allocation2 + $0x48] sm:$0xff] (!%p1094_p7)  ;;  %889 = vst [vmem:[%s1934_s4 + $0x80] sm:$0xff] (!%p1094_p7), %v857_v33  ;;  %v860_v36 = vld [vmem:[#allocation2 + $0x98] sm:$0xff] (!%p1094_p7) }
 0x1a9   : > { %816 = vst [vmem:[#allocation2 + $0x58] sm:$0xff] %v784_v39  ;;  %832 = vst [vmem:[#allocation2 + $0xd8] sm:$0xff] %v800_v40  ;;  %v1154_v41 = vpop.f32.mrb[24].mxu0  ;;  %v1202_v42 = vpop.f32.mrb[24].mxu1  ;;  %v861_v37 = vld [vmem:[#allocation2 + $0xa0] sm:$0xff] (!%p1094_p7)  ;;  %v862_v38 = vld [vmem:[#allocation2 + $0xa8] sm:$0xff] (!%p1094_p7) }
 0x1aa   : > { %v1155_v44 = vpop.f32.mrb[25].mxu0  ;;  %v1203_v46 = vpop.f32.mrb[25].mxu1  ;;  %882 = vst [vmem:[%s1934_s4 + $0x48] sm:$0xff] (!%p1094_p7), %v850_v26  ;;  %891 = vst [vmem:[%s1934_s4 + $0x90] sm:$0xff] (!%p1094_p7), %v859_v35  ;;  %v863_v39 = vld [vmem:[#allocation2 + $0xb0] sm:$0xff] (!%p1094_p7)  ;;  %v864_v40 = vld [vmem:[#allocation2 + $0xb8] sm:$0xff] (!%p1094_p7) }
 0x1ab   : > { %v1156_v47 = vadd.f32 %v1155_v44, %v1154_v41  ;;  %v1204_v48 = vadd.f32 %v1203_v46, %v1202_v42  ;;  %v1157_v49 = vpop.f32.mrb[26].mxu0  ;;  %v1205_v50 = vpop.f32.mrb[26].mxu1  ;;  %892 = vst [vmem:[%s1934_s4 + $0x98] sm:$0xff] (!%p1094_p7), %v860_v36  ;;  %893 = vst [vmem:[%s1934_s4 + $0xa0] sm:$0xff] (!%p1094_p7), %v861_v37  ;;  %v865_v41 = vld [vmem:[#allocation2 + $0xc0] sm:$0xff] (!%p1094_p7)  ;;  %v866_v42 = vld [vmem:[#allocation2 + $0xc8] sm:$0xff] (!%p1094_p7) }
 0x1ac   : > { %v1158_v52 = vpop.f32.mrb[27].mxu0  ;;  %v1206_v54 = vpop.f32.mrb[27].mxu1  ;;  %894 = vst [vmem:[%s1934_s4 + $0xa8] sm:$0xff] (!%p1094_p7), %v862_v38  ;;  %895 = vst [vmem:[%s1934_s4 + $0xb0] sm:$0xff] (!%p1094_p7), %v863_v39 }
 0x1ad   : > { %v785_v55 = vadd.f32 %v1156_v47, %v272_v43  ;;  %v801_v56 = vadd.f32 %v1204_v48, %v288_v45  ;;  %v1159_v57 = vadd.f32 %v1158_v52, %v1157_v49  ;;  %v1207_v58 = vadd.f32 %v1206_v54, %v1205_v50  ;;  %896 = vst [vmem:[%s1934_s4 + $0xb8] sm:$0xff] (!%p1094_p7), %v864_v40 }
 0x1ae   : > { %v851_v27 = vld [vmem:[#allocation2 + $0x50] sm:$0xff] (!%p1094_p7)  ;;  %897 = vst [vmem:[%s1934_s4 + $0xc0] sm:$0xff] (!%p1094_p7), %v865_v41  ;;  %898 = vst [vmem:[%s1934_s4 + $0xc8] sm:$0xff] (!%p1094_p7), %v866_v42 }
 0x1af   : > { %817 = vst [vmem:[#allocation2 + $0x60] sm:$0xff] %v785_v55  ;;  %833 = vst [vmem:[#allocation2 + $0xe0] sm:$0xff] %v801_v56  ;;  %v786_v59 = vadd.f32 %v1159_v57, %v273_v51  ;;  %v802_v60 = vadd.f32 %v1207_v58, %v289_v53  ;;  %v867_v43 = vld [vmem:[#allocation2 + $0xd0] sm:$0xff] (!%p1094_p7) }
 0x1b0   : > { %v852_v28 = vld [vmem:[#allocation2 + $0x58] sm:$0xff] (!%p1094_p7)  ;;  %883 = vst [vmem:[%s1934_s4 + $0x50] sm:$0xff] (!%p1094_p7), %v851_v27  ;;  %899 = vst [vmem:[%s1934_s4 + $0xd0] sm:$0xff] (!%p1094_p7), %v867_v43 }
 0x1b1   : > { %818 = vst [vmem:[#allocation2 + $0x68] sm:$0xff] %v786_v59  ;;  %834 = vst [vmem:[#allocation2 + $0xe8] sm:$0xff] %v802_v60  ;;  %v1160_v61 = vpop.f32.mrb[28].mxu0  ;;  %v1208_v62 = vpop.f32.mrb[28].mxu1  ;;  %v868_v44 = vld [vmem:[#allocation2 + $0xd8] sm:$0xff] (!%p1094_p7) }
 0x1b2   : > { %v1161_v0 = vpop.f32.mrb[29].mxu0  ;;  %v1209_v2 = vpop.f32.mrb[29].mxu1  ;;  %884 = vst [vmem:[%s1934_s4 + $0x58] sm:$0xff] (!%p1094_p7), %v852_v28  ;;  %900 = vst [vmem:[%s1934_s4 + $0xd8] sm:$0xff] (!%p1094_p7), %v868_v44 }
 0x1b3   : > { %v1162_v3 = vadd.f32 %v1161_v0, %v1160_v61  ;;  %v1210_v4 = vadd.f32 %v1209_v2, %v1208_v62  ;;  %v1163_v5 = vpop.f32.mrb[30].mxu0  ;;  %v1211_v6 = vpop.f32.mrb[30].mxu1  ;;  %840 = sbr.rel (%p1094_p7) target bundleno = 451 (0x1c3), region = 44 }
 0x1b4   : > { %v1164_v8 = vpop.f32.mrb[31].mxu0  ;;  %v1212_v10 = vpop.f32.mrb[31].mxu1 }
 0x1b5   : > { %v787_v11 = vadd.f32 %v1162_v3, %v274_v63  ;;  %v803_v12 = vadd.f32 %v1210_v4, %v290_v1  ;;  %v1165_v13 = vadd.f32 %v1164_v8, %v1163_v5  ;;  %v1213_v14 = vadd.f32 %v1212_v10, %v1211_v6 }
 0x1b6   : > { %v853_v29 = vld [vmem:[#allocation2 + $0x60] sm:$0xff] (!%p1094_p7) }
 0x1b7   : > { %819 = vst [vmem:[#allocation2 + $0x70] sm:$0xff] %v787_v11  ;;  %835 = vst [vmem:[#allocation2 + $0xf0] sm:$0xff] %v803_v12  ;;  %v788_v15 = vadd.f32 %v1165_v13, %v275_v7  ;;  %v804_v16 = vadd.f32 %v1213_v14, %v291_v9  ;;  %v869_v45 = vld [vmem:[#allocation2 + $0xe0] sm:$0xff] (!%p1094_p7) }
 0x1b8   : > { %v854_v30 = vld [vmem:[#allocation2 + $0x68] sm:$0xff] (!%p1094_p7)  ;;  %885 = vst [vmem:[%s1934_s4 + $0x60] sm:$0xff] (!%p1094_p7), %v853_v29  ;;  %901 = vst [vmem:[%s1934_s4 + $0xe0] sm:$0xff] (!%p1094_p7), %v869_v45 }
 0x1b9   : > { %820 = vst [vmem:[#allocation2 + $0x78] sm:$0xff] %v788_v15  ;;  %836 = vst [vmem:[#allocation2 + $0xf8] sm:$0xff] %v804_v16  ;;  %v870_v46 = vld [vmem:[#allocation2 + $0xe8] sm:$0xff] (!%p1094_p7) }
 0x1ba   : > { %886 = vst [vmem:[%s1934_s4 + $0x68] sm:$0xff] %v854_v30  ;;  %902 = vst [vmem:[%s1934_s4 + $0xe8] sm:$0xff] %v870_v46 }
 0x1be   : > { %v855_v31 = vld [vmem:[#allocation2 + $0x70] sm:$0xff] }
 0x1bf   : > { %887 = vst [vmem:[%s1934_s4 + $0x70] sm:$0xff] %v855_v31  ;;  %v871_v47 = vld [vmem:[#allocation2 + $0xf0] sm:$0xff] }
 0x1c0   : > { %v856_v32 = vld [vmem:[#allocation2 + $0x78] sm:$0xff]  ;;  %903 = vst [vmem:[%s1934_s4 + $0xf0] sm:$0xff] %v871_v47 }
 0x1c1   : > { %888 = vst [vmem:[%s1934_s4 + $0x78] sm:$0xff] %v856_v32  ;;  %v872_v48 = vld [vmem:[#allocation2 + $0xf8] sm:$0xff] }
 0x1c2   : > { %904 = vst [vmem:[%s1934_s4 + $0xf8] sm:$0xff] %v872_v48 }
 0x1c3 PF: > { %s2136_s18 = sld [smem:[#allocation12_spill]]  ;;  %s2137_s30 = sld [smem:[#allocation16_spill]] }
 0x1c4   : > { %s919_s28 = sshll.u32 %s1934_s4, 4  ;;  %s2029_s12 = scalar_lea.sflag [#allocation5], %s216_s8  ;;  %s2025_s28 = int_to_ptr.vmem [resolvable:$true] %s919_s28 }
 0x1c5   : > { %s1494_s7 = scalar_lea.vmem %s2025_s28, 4096  ;;  %p2138_p0 = scmp.ne.s32.totalorder %s2130_s15, 0 }
 0x1c6   : > { %p1495_p12 = scmp.ne.s32.totalorder %s2025_s28, %s1494_s7  ;;  %s1654_s3 = smov [#allocation8]  }
 0x1c7   : > { %s1498_s0 = sshll.u32 %s1654_s3, 4  ;;  %s1499_s0 = int_to_ptr.vmem [resolvable:$false] %s1498_s0 }
 0x1c8   : > { %p1496_p10 = pnand %p1495_p12, %p2138_p0  ;;  %s1500_s24 = scalar_lea.vmem %s1499_s0, 8192 }
 0x1c9   : > { %s1101_s19 = sshll.u32 %s2136_s18, 12  ;;  %p1501_p6 = scmp.lt.s32.totalorder %s2025_s28, %s1499_s0 }
 0x1ca   : > { %s2022_s25 = scalar_lea.hbm %s2137_s30, %s1101_s19  ;;  %p1497_p3 = pneg %p1496_p10 }
 0x1cb   : > { %p1502_p9 = scmp.lt.s32.totalorder %s1500_s24, %s1494_s7 }
 0x1cd   : > { %p1503_p1 = por %p1502_p9, %p1501_p6 }
 0x1cf   : > { %p1504_p11 = pnand %p1503_p1, %p1497_p3 }
 0x1d1   : > { %1507 = shalt.err (!%p1504_p11)
}
 0x1d2   : > { %s1508_s8 = scalar_lea.hbm %s2022_s25, 4096  ;;  %s1512_s18 = scalar_lea.hbm %s2137_s30, 12288 }
 0x1d3   : > { %p1509_p4 = scmp.ne.s32.totalorder %s2022_s25, %s1508_s8  ;;  %p1513_p5 = scmp.lt.u32.totalorder %s2022_s25, %s2137_s30 }
 0x1d4   : > { %p1514_p13 = scmp.lt.u32.totalorder %s1512_s18, %s1508_s8  ;;  %p1516_p12 = scmp.lt.u32.totalorder %s1508_s8, %s2022_s25 }
 0x1d5   : > { %p1510_p2 = pnand %p1509_p4, %p2138_p0 }
 0x1d6   : > { %p1515_p7 = por %p1514_p13, %p1513_p5 }
 0x1d7   : > { %p1511_p8 = pneg %p1510_p2 }
 0x1d8   : > { %p1517_p10 = por %p1516_p12, %p1515_p7 }
 0x1da   : > { %p1518_p3 = pnand %p1517_p10, %p1511_p8 }
 0x1dc   : > { %1521 = shalt.err (!%p1518_p3)
}
 0x1dd   : > { %s1655_s27 = smov 128   ;;  %s1656_s7 = smov 8  }
 0x1de   : > { %1235 = dma.vmem_to_hbm [thread:$0]  (%p2138_p0), %s2025_s28, 4096, %s2022_s25, %s2029_s12, %s1655_s27, %s1655_s27, %s1656_s7  }
 0x1df PF: > { %p1249_p6 = scmp.ge.s32.totalorder %s1644_s22, 2  ;;  %s934_s3 = sand.u32 1, %s1592_s9  }
 0x1e0   : > { %p2139_p9 = scmp.ne.s32.totalorder %s2131_s23, 0  ;;  %s935_s0 = scalar_lea.sflag [#allocation5], %s934_s3 }
 0x1e2   : > { %p1245_p1 = pnand %p1249_p6, %p2139_p9 }
 0x1e4   : > { %1587 = dma.done.wait (!%p1245_p1), %s935_s0, 4096  }
 0x1e5   : > { %1589 = vsyncadd (!%p1245_p1), %s935_s0, 4294963200  ;;  %s21_s22 = sadd.s32 1, %s1644_s22   ;;  %s2141_s23 = sld [smem:[#allocation13_spill]] }
 0x1e6   : > { %p2058_p11 = scmp.ge.s32.totalorder %s21_s22, 11   ;;  %s2142_s25 = sld [smem:[#allocation14_spill]] }
 0x1e7   : > { %s2143_s9 = smov %s1596_s10  ;;  %s2144_s10 = smov %s1600_s11 }
 0x1e8   : > { %s2145_s11 = smov %s1772_s5  ;;  %s2146_s12 = smov %s1608_s13 }
 0x1e9   : > { %s2147_s13 = smov %s1612_s14  ;;  %s2148_s14 = smov %s1846_s2 }
 0x1ea   : > { %s2149_s15 = smov %s1620_s16  ;;  %s2150_s16 = smov %s1624_s17 }
 0x1eb   : > { %s2151_s17 = smov %s1775_s6  ;;  %s2152_s18 = smov %s1636_s20 }
 0x1ec   : > { %s2153_s19 = smov %s1640_s21  ;;  %s2154_s20 = smov %s2141_s23 }
 0x1ed   : > { %s2155_s21 = smov %s2142_s25  ;;  %20 = sbr.rel (!%p2058_p11) target bundleno = 15 (0xf), region = 94 }
 0x1f4   :  { %940 = vsyncpa [#allocation4], 1 }
 0x1f5   :  { %942 = vsyncpa [#allocation4 + $0x1], 1 }
 0x1f6   :  { %943 = vsyncpa [#allocation7], 1 }
 0x1f7   :  { %945 = vsyncpa [#allocation7 + $0x1], 1 }
 0x1f8   :  { %946 = vsyncpa [#allocation5], 1 }
 0x1f9   :  { %948 = vsyncpa [#allocation5 + $0x1], 1 }

</bundles_post_ra>
